<compile_context>
chip_gen: v6e
topology: v6e:2x2x1
jax: 0.10.0
libtpu: 0.0.40
codegen_flags: <defaults>
</compile_context>

<pallas_src>
import jax
import jax.numpy as jnp
from jax.experimental import pallas as pl
from jax.experimental.pallas import tpu as pltpu

_LANE = 128


def _round_up(n, m):
    return (n + m - 1) // m * m


def _choose_block_b(B, din, itemsize, block_b=None):
    """Pick the batch tile TB (multiple of 8; multiple of 128 when large)."""
    if block_b is not None:
        return max(8, min(_round_up(block_b, 8), _round_up(B, 8)))
    # Target ~1 MiB of streamed activation bytes per tile so the ~0.35us
    # per-grid-step overhead is well amortized.
    target_stream_bytes = 1 << 20
    tb = _round_up(max(512, target_stream_bytes // max(1, din * itemsize)), 512)
    # VMEM budget per row, using LANE-PADDED widths: 2 double-buffered x tiles
    # plus ~4 f32 H(->128)-wide intermediates the compiler keeps live in VMEM.
    row_bytes = 2 * _round_up(din, _LANE) * itemsize + 4 * _LANE * 4
    vmem_budget = 12 << 20        # stays inside every gen's scoped VMEM
    tb_vmem = max(8, (vmem_budget // row_bytes) // 8 * 8)
    tb = max(8, min(tb, tb_vmem, 8192))
    if tb >= _LANE:
        tb = tb // _LANE * _LANE  # keep output stores lane-dense
    # v7x megacore: ensure >= 2 batch tiles when B is big enough so the
    # "parallel" batch axis shards across both TensorCores.
    if B >= 2048:
        tb = min(tb, _round_up((B + 1) // 2, _LANE))
    return max(8, min(tb, _round_up(B, 8)))


def _mtrl_att_kernel(x_ref, w1_ref, b1_ref, w2_ref, b2_ref, w3t_ref, b3_ref, o_ref):
    # Layer 1: Linear(din, 64) + ReLU.  x streams in its HBM dtype; the bf16
    # cast happens here at the MXU boundary (VPU work hidden under the DMA).
    x = x_ref[...].astype(w1_ref.dtype)
    h = jnp.dot(x, w1_ref[...], preferred_element_type=jnp.float32)
    h = jnp.maximum(h + b1_ref[...], 0.0)

    # Layer 2: Linear(64, 64) + ReLU (f32 accumulation).
    h = jnp.dot(h.astype(w2_ref.dtype), w2_ref[...],
                preferred_element_type=jnp.float32)
    h = jnp.maximum(h + b2_ref[...], 0.0)

    # Layer 3: Linear(64, 1) + Sigmoid, computed as W3_pad @ h^T (q@k.T-style
    # NT dot in f32).  Row 0 of w3t holds w3^T, rows 1..7 are zero padding.
    # The contraction over H lands the result lane-dense, so the bias add,
    # sigmoid and output store all run on full 128-lane vectors instead of a
    # (TB, 1) column of masked partial stores.
    z = jax.lax.dot_general(w3t_ref[...], h,
                            dimension_numbers=(((1,), (1,)), ((), ())),
                            preferred_element_type=jnp.float32)   # (8, TB)
    z = z[0:1, :] + b3_ref[0, 0]                                  # (1, TB)
    o_ref[...] = jax.nn.sigmoid(z)[None].astype(o_ref.dtype)      # (1, 1, TB)


def mtrl_att_forward(x, params, *, block_b=None, compute_dtype=jnp.bfloat16):
    """x: (B, din).  params: dict of w1,b1,w2,b2,w3,b3 (f32)."""
    w1, b1, w2, b2, w3, b3 = (params[k] for k in ("w1", "b1", "w2", "b2", "w3", "b3"))
    B, din = x.shape
    H = w1.shape[1]
    assert w1.shape == (din, H) and w2.shape == (H, H) and w3.shape == (H, 1)
    assert b1.shape == (1, H) and b2.shape == (1, H) and b3.shape == (1, 1)

    TB = _choose_block_b(B, din, x.dtype.itemsize, block_b)
    num_tiles = -(-B // TB)   # ragged tail handled by Pallas partial blocks

    # Weights: tiny, cast once in the wrapper, resident in VMEM across tiles.
    w1c = w1.astype(compute_dtype)
    w2c = w2.astype(compute_dtype)
    # Layer-3 weight as an (8, H) f32 slab: row 0 = w3^T, rows 1..7 zero.
    w3t = jnp.zeros((8, H), jnp.float32).at[0, :].set(w3[:, 0].astype(jnp.float32))
    b1f = b1.astype(jnp.float32)
    b2f = b2.astype(jnp.float32)
    b3f = b3.reshape(1, 1).astype(jnp.float32)

    const2 = lambda i: (0, 0)

    cost = pl.CostEstimate(
        flops=2 * B * (din * H + H * H + H),
        transcendentals=B,  # one exp per sigmoid
        bytes_accessed=(x.size * x.dtype.itemsize               # streamed activations (stored dtype)
                        + num_tiles * TB * 4                    # lane-dense f32 output
                        + w1c.size * 2 + w2c.size * 2           # bf16 weights
                        + (w3t.size + b1f.size + b2f.size + b3f.size) * 4),
    )

    out = pl.pallas_call(
        _mtrl_att_kernel,
        out_shape=jax.ShapeDtypeStruct((num_tiles, 1, TB), jnp.float32),
        grid=(num_tiles,),
        in_specs=[
            pl.BlockSpec((TB, din), lambda i: (i, 0)),           # x: streamed / double-buffered
            pl.BlockSpec((din, H), const2),                      # w1: resident
            pl.BlockSpec((1, H), const2),                        # b1: resident
            pl.BlockSpec((H, H), const2),                        # w2: resident
            pl.BlockSpec((1, H), const2),                        # b2: resident
            pl.BlockSpec((8, H), const2),                        # w3^T (padded rows): resident
            pl.BlockSpec(memory_space=pltpu.MemorySpace.SMEM),   # b3: scalar in SMEM
        ],
        out_specs=pl.BlockSpec((1, 1, TB), lambda i: (i, 0, 0)),  # lane-dense output row per tile
        compiler_params=pltpu.CompilerParams(
            dimension_semantics=("parallel",),        # shard batch tiles across TCs on v7x
            vmem_limit_bytes=32 * 1024 * 1024,        # raise v5e's 16 MiB scoped default
        ),
        cost_estimate=cost,
    )(x, w1c, b1f, w2c, b2f, w3t, b3f)

    # (num_tiles, 1, TB) -> (B, 1); garbage lanes of a ragged tail are dropped.
    return out.reshape(-1)[:B].reshape(B, 1)


def init_params(key, din, hidden=64):
    """Deterministic init mimicking nn.Linear default (uniform +-1/sqrt(fan_in))."""
    ks = jax.random.split(key, 6)

    def lin(kw, kb, fan_in, fan_out):
        bound = 1.0 / jnp.sqrt(jnp.float32(fan_in))
        w = jax.random.uniform(kw, (fan_in, fan_out), jnp.float32, -bound, bound)
        b = jax.random.uniform(kb, (1, fan_out), jnp.float32, -bound, bound)
        return w, b

    w1, b1 = lin(ks[0], ks[1], din, hidden)
    w2, b2 = lin(ks[2], ks[3], hidden, hidden)
    w3, b3 = lin(ks[4], ks[5], hidden, 1)
    return {"w1": w1, "b1": b1, "w2": w2, "b2": b2, "w3": w3, "b3": b3}


def mtrl_att_reference(x, p):
    """Pure f32 reference (matches the PyTorch module semantics)."""
    h = jax.nn.relu(x @ p["w1"] + p["b1"])
    h = jax.nn.relu(h @ p["w2"] + p["b2"])
    return jax.nn.sigmoid(h @ p["w3"] + p["b3"])


def mtrl_att_reference_matched(x, p, compute_dtype=jnp.bfloat16):
    """Reference mirroring the kernel's bf16-input / f32-accumulate math."""
    w1 = p["w1"].astype(compute_dtype)
    w2 = p["w2"].astype(compute_dtype)
    h = jnp.maximum(jnp.dot(x.astype(compute_dtype), w1,
                            preferred_element_type=jnp.float32) + p["b1"], 0.0)
    h = jnp.maximum(jnp.dot(h.astype(compute_dtype), w2,
                            preferred_element_type=jnp.float32) + p["b2"], 0.0)
    z = h @ p["w3"] + p["b3"]   # layer 3 stays f32 in the kernel too
    return jax.nn.sigmoid(z)


if __name__ == "__main__":
    key = jax.random.PRNGKey(0)
    k_x, k_p = jax.random.split(key)

    B, din = 16, 32
    x = jax.random.normal(k_x, (B, din), jnp.float32)
    params = init_params(k_p, din)

    out = jax.block_until_ready(mtrl_att_forward(x, params))
    assert out.shape == (B, 1)

    ref_matched = mtrl_att_reference_matched(x, params)
    ref_f32 = mtrl_att_reference(x, params)
    assert jnp.allclose(out, ref_matched, atol=2e-3, rtol=2e-3), "mismatch vs bf16-matched reference"
    assert jnp.allclose(out, ref_f32, atol=3e-2), "mismatch vs f32 reference"

    print("KERNEL_OK")
</pallas_src>

<mosaic_0001>
module attributes {stable_mosaic.version = 11 : i64} {
  func.func @_mtrl_att_kernel(%arg0: i32, %arg1: memref<16x32xf32, #tpu.memory_space<vmem>>, %arg2: memref<32x64xbf16, #tpu.memory_space<vmem>>, %arg3: memref<1x64xf32, #tpu.memory_space<vmem>>, %arg4: memref<64x64xbf16, #tpu.memory_space<vmem>>, %arg5: memref<1x64xf32, #tpu.memory_space<vmem>>, %arg6: memref<8x64xf32, #tpu.memory_space<vmem>>, %arg7: memref<1x1xf32, #tpu.memory_space<smem>>, %arg8: memref<1x1x16xf32, #tpu.memory_space<vmem>>) attributes {dimension_semantics = [#tpu.dimension_semantics<parallel>], iteration_bounds = array<i64: 1>, scalar_prefetch = 0 : i64, scratch_operands = 0 : i64, tpu.core_type = #tpu.core_type<tc>, window_params = [{transform_indices = @transform_0, window_bounds = array<i64: 16, 32>}, {pipeline_mode = #tpu.pipeline_mode<synchronous>, transform_indices = @transform_1, window_bounds = array<i64: 32, 64>}, {pipeline_mode = #tpu.pipeline_mode<synchronous>, transform_indices = @transform_2, window_bounds = array<i64: 1, 64>}, {pipeline_mode = #tpu.pipeline_mode<synchronous>, transform_indices = @transform_3, window_bounds = array<i64: 64, 64>}, {pipeline_mode = #tpu.pipeline_mode<synchronous>, transform_indices = @transform_4, window_bounds = array<i64: 1, 64>}, {pipeline_mode = #tpu.pipeline_mode<synchronous>, transform_indices = @transform_5, window_bounds = array<i64: 8, 64>}, {transform_indices = @transform_6, window_bounds = array<i64: 1, 1>}, {transform_indices = @transform_7, window_bounds = array<i64: 1, 1, 16>}]} {
    %c0 = arith.constant 0 : index
    %c0_0 = arith.constant 0 : index
    %0 = vector.load %arg1[%c0, %c0_0] : memref<16x32xf32, #tpu.memory_space<vmem>>, vector<16x32xf32>
    %1 = arith.truncf %0 : vector<16x32xf32> to vector<16x32xbf16>
    %c0_1 = arith.constant 0 : index
    %c0_2 = arith.constant 0 : index
    %2 = vector.load %arg2[%c0_1, %c0_2] : memref<32x64xbf16, #tpu.memory_space<vmem>>, vector<32x64xbf16>
    %cst = arith.constant dense<0.000000e+00> : vector<16x64xf32>
    %3 = tpu.matmul %1, %2, %cst {dimension_numbers = #tpu.dot_dimension_numbers<[1], [0], [0], [1], [0, 0, 1, 1], [], []>} : vector<16x32xbf16>, vector<32x64xbf16>, vector<16x64xf32> -> vector<16x64xf32>
    %c0_3 = arith.constant 0 : index
    %c0_4 = arith.constant 0 : index
    %4 = vector.load %arg3[%c0_3, %c0_4] : memref<1x64xf32, #tpu.memory_space<vmem>>, vector<1x64xf32>
    %5 = vector.broadcast %4 : vector<1x64xf32> to vector<16x64xf32>
    %6 = arith.addf %3, %5 : vector<16x64xf32>
    %cst_5 = arith.constant 0.000000e+00 : f32
    %7 = vector.broadcast %cst_5 : f32 to vector<16x64xf32>
    %8 = arith.maximumf %6, %7 : vector<16x64xf32>
    %9 = arith.truncf %8 : vector<16x64xf32> to vector<16x64xbf16>
    %c0_6 = arith.constant 0 : index
    %c0_7 = arith.constant 0 : index
    %10 = vector.load %arg4[%c0_6, %c0_7] : memref<64x64xbf16, #tpu.memory_space<vmem>>, vector<64x64xbf16>
    %cst_8 = arith.constant dense<0.000000e+00> : vector<16x64xf32>
    %11 = tpu.matmul %9, %10, %cst_8 {dimension_numbers = #tpu.dot_dimension_numbers<[1], [0], [0], [1], [0, 0, 1, 1], [], []>} : vector<16x64xbf16>, vector<64x64xbf16>, vector<16x64xf32> -> vector<16x64xf32>
    %c0_9 = arith.constant 0 : index
    %c0_10 = arith.constant 0 : index
    %12 = vector.load %arg5[%c0_9, %c0_10] : memref<1x64xf32, #tpu.memory_space<vmem>>, vector<1x64xf32>
    %13 = vector.broadcast %12 : vector<1x64xf32> to vector<16x64xf32>
    %14 = arith.addf %11, %13 : vector<16x64xf32>
    %cst_11 = arith.constant 0.000000e+00 : f32
    %15 = vector.broadcast %cst_11 : f32 to vector<16x64xf32>
    %16 = arith.maximumf %14, %15 : vector<16x64xf32>
    %c0_12 = arith.constant 0 : index
    %c0_13 = arith.constant 0 : index
    %17 = vector.load %arg6[%c0_12, %c0_13] : memref<8x64xf32, #tpu.memory_space<vmem>>, vector<8x64xf32>
    %cst_14 = arith.constant dense<0.000000e+00> : vector<8x16xf32>
    %18 = tpu.matmul %17, %16, %cst_14 {dimension_numbers = #tpu.dot_dimension_numbers<[1], [1], [0], [0], [0, 0, 1, 0], [], []>} : vector<8x64xf32>, vector<16x64xf32>, vector<8x16xf32> -> vector<8x16xf32>
    %19 = vector.extract_strided_slice %18 {offsets = [0, 0], sizes = [1, 16], strides = [1, 1]} : vector<8x16xf32> to vector<1x16xf32>
    %c0_15 = arith.constant 0 : index
    %c0_16 = arith.constant 0 : index
    %20 = memref.load %arg7[%c0_15, %c0_16] : memref<1x1xf32, #tpu.memory_space<smem>>
    %21 = vector.broadcast %20 : f32 to vector<1x16xf32>
    %22 = arith.addf %19, %21 : vector<1x16xf32>
    %23 = arith.negf %22 : vector<1x16xf32>
    %24 = math.exp %23 : vector<1x16xf32>
    %cst_17 = arith.constant 1.000000e+00 : f32
    %25 = vector.broadcast %cst_17 : f32 to vector<1x16xf32>
    %26 = arith.addf %25, %24 : vector<1x16xf32>
    %27 = arith.divf %25, %26 : vector<1x16xf32>
    %28 = vector.shape_cast %27 : vector<1x16xf32> to vector<1x1x16xf32>
    %c0_18 = arith.constant 0 : index
    %c0_19 = arith.constant 0 : index
    %c0_20 = arith.constant 0 : index
    %29 = vector.load %arg8[%c0_18, %c0_19, %c0_20] : memref<1x1x16xf32, #tpu.memory_space<vmem>>, vector<1x1x16xf32>
    tpu.vector_store %arg8[%c0_18, %c0_19, %c0_20], %28 {strides = array<i32>} : memref<1x1x16xf32, #tpu.memory_space<vmem>>, vector<1x1x16xf32>,
    return
  }
  func.func @transform_0(%arg0: i32) -> (i32, i32) {
    %c0_i32 = arith.constant 0 : i32
    %c0_i32_0 = arith.constant 0 : i32
    return %arg0, %c0_i32 : i32, i32
  }
  func.func @transform_1(%arg0: i32) -> (i32, i32) {
    %c0_i32 = arith.constant 0 : i32
    %c0_i32_0 = arith.constant 0 : i32
    %c0_i32_1 = arith.constant 0 : i32
    return %c0_i32, %c0_i32_0 : i32, i32
  }
  func.func @transform_2(%arg0: i32) -> (i32, i32) {
    %c0_i32 = arith.constant 0 : i32
    %c0_i32_0 = arith.constant 0 : i32
    %c0_i32_1 = arith.constant 0 : i32
    return %c0_i32, %c0_i32_0 : i32, i32
  }
  func.func @transform_3(%arg0: i32) -> (i32, i32) {
    %c0_i32 = arith.constant 0 : i32
    %c0_i32_0 = arith.constant 0 : i32
    %c0_i32_1 = arith.constant 0 : i32
    return %c0_i32, %c0_i32_0 : i32, i32
  }
  func.func @transform_4(%arg0: i32) -> (i32, i32) {
    %c0_i32 = arith.constant 0 : i32
    %c0_i32_0 = arith.constant 0 : i32
    %c0_i32_1 = arith.constant 0 : i32
    return %c0_i32, %c0_i32_0 : i32, i32
  }
  func.func @transform_5(%arg0: i32) -> (i32, i32) {
    %c0_i32 = arith.constant 0 : i32
    %c0_i32_0 = arith.constant 0 : i32
    %c0_i32_1 = arith.constant 0 : i32
    return %c0_i32, %c0_i32_0 : i32, i32
  }
  func.func @transform_6(%arg0: i32) -> (i32, i32) {
    %c0_i32 = arith.constant 0 : i32
    %c0_i32_0 = arith.constant 0 : i32
    %c0_i32_1 = arith.constant 0 : i32
    return %c0_i32, %c0_i32_0 : i32, i32
  }
  func.func @transform_7(%arg0: i32) -> (i32, i32, i32) {
    %c0_i32 = arith.constant 0 : i32
    %c0_i32_0 = arith.constant 0 : i32
    %c0_i32_1 = arith.constant 0 : i32
    return %arg0, %c0_i32, %c0_i32_0 : i32, i32, i32
  }
}

</mosaic_0001>

<bundles_post_ra>
// kernel: tpu_custom_call.1
= control target key start
LH: loop header
LB: loop body
LE: loop exit
PB: predicated region body
PF: predicated region fallthrough
CT: control target
= control target key end

     0   :  { %13 = vsyncpa [#allocation4], 0  ;;  %s576_s0 = inlined_call_operand.hbm [shape: f32[16,32], index: 0, kind: input, shape index: {}]   ;;  %s577_s1 = inlined_call_operand.hbm [shape: bf16[32,64], index: 1, kind: input, shape index: {}]   ;;  %s578_s2 = inlined_call_operand.vmem [shape: f32[1,64], index: 2, kind: input, shape index: {}]   ;;  %s579_s3 = inlined_call_operand.hbm [shape: bf16[64,64], index: 3, kind: input, shape index: {}]   ;;  %s580_s4 = inlined_call_operand.vmem [shape: f32[1,64], index: 4, kind: input, shape index: {}]   ;;  %s581_s5 = inlined_call_operand.vmem [shape: f32[8,64], index: 5, kind: input, shape index: {}]   ;;  %s582_s6 = inlined_call_operand.<no memory space> [shape: f32[1,1], index: 6, kind: input, shape index: {}]   ;;  %s583_s7 = inlined_call_operand.hbm [shape: f32[1,1,16], index: 7, kind: output, shape index: {}]  }
   0x1   :  { %14 = vsyncpa [#allocation7], 0 }
   0x2   :  { %15 = vsyncpa [#allocation5], 0  ;;  %s495_s24 = smov [#allocation6]  }
   0x3   :  { %s33_s25 = sshll.u32 %s495_s24, 4  ;;  %s34_s25 = int_to_ptr.vmem [resolvable:$true] %s33_s25 }
   0x4   :  { %s417_s26 = scalar_lea.vmem %s34_s25, 256  ;;  %p422_p1 = scmp.lt.s32.totalorder %s34_s25, %s34_s25 }
   0x5   :  { %p418_p0 = scmp.ne.s32.totalorder %s34_s25, %s417_s26  ;;  %p423_p2 = scmp.lt.s32.totalorder %s417_s26, %s417_s26 }
   0x7   :  { %p424_p3 = por %p423_p2, %p422_p1 }
   0x9   :  { %p425_p4 = pnand %p424_p3, %p418_p0 }
   0xb   :  { %428 = shalt.err (!%p425_p4)
}
   0xc   :  { %s496_s27 = smov 64   ;;  %s497_s28 = smov 4  }
   0xd   :  { %39 = dma.hbm_to_vmem [thread:$0]  %s577_s1, 256, %s34_s25, [#allocation7], %s496_s27, %s496_s27, %s497_s28  }
   0xe   :  { %s498_s8 = smov [#allocation3]  }
   0xf   :  { %s21_s9 = sshll.u32 %s498_s8, 4  ;;  %s22_s9 = int_to_ptr.vmem [resolvable:$true] %s21_s9 }
  0x10   :  { %s437_s10 = scalar_lea.vmem %s22_s9, 256  ;;  %p442_p6 = scmp.lt.s32.totalorder %s22_s9, %s22_s9 }
  0x11   :  { %p438_p5 = scmp.ne.s32.totalorder %s22_s9, %s437_s10  ;;  %p443_p7 = scmp.lt.s32.totalorder %s437_s10, %s437_s10 }
  0x13   :  { %p444_p8 = por %p443_p7, %p442_p6 }
  0x15   :  { %p445_p9 = pnand %p444_p8, %p438_p5 }
  0x17   :  { %448 = shalt.err (!%p445_p9)
}
  0x18   :  { %s499_s11 = smov 128   ;;  %s500_s12 = smov 8  }
  0x19   :  { %27 = dma.hbm_to_vmem [thread:$0]  %s576_s0, 256, %s22_s9, [#allocation4], %s499_s11, %s499_s11, %s500_s12  }
  0x1a   :  { %s501_s15 = smov [#allocation8]  }
  0x1b   :  { %s47_s16 = sshll.u32 %s501_s15, 4  ;;  %s48_s16 = int_to_ptr.vmem [resolvable:$true] %s47_s16 }
  0x1c   :  { %s457_s1 = scalar_lea.vmem %s48_s16, 512  ;;  %p462_p11 = scmp.lt.s32.totalorder %s48_s16, %s48_s16 }
  0x1d   :  { %p458_p10 = scmp.ne.s32.totalorder %s48_s16, %s457_s1  ;;  %p463_p12 = scmp.lt.s32.totalorder %s457_s1, %s457_s1 }
  0x1f   :  { %p464_p13 = por %p463_p12, %p462_p11 }
  0x21   :  { %p465_p0 = pnand %p464_p13, %p458_p10 }
  0x23   :  { %468 = shalt.err (!%p465_p0)
}
  0x24   :  { %53 = dma.hbm_to_vmem [thread:$0]  %s579_s3, 512, %s48_s16, [#allocation7], %s496_s27, %s496_s27, %s497_s28  }
  0x25   :  { %489 = dma.done.wait [#allocation4], 256  }
  0x26   :  { %490 = vsyncadd [#allocation4], 4294967040 }
  0x27   :  { %491 = dma.done.wait [#allocation7], 768  }
  0x28   :  { %492 = vsyncadd [#allocation7], 4294966528  ;;  %v502_v0 = vmov 0.0   ;;  %vm503_vm0 = vmmov 0   ;;  %v399_v1 = vld [vmem:[#allocation6 + $0x8] sm:$0xff]   ;;  %v400_v2 = vld [vmem:[#allocation6] sm:$0xff]   ;;  %v311_v30 = vstv %s582_s6 }
  0x29   :  { %362 = vmatprep.subr.bf16.mxu0 %v502_v0  ;;  %366 = vmatprep.mubr.msk.bf16.mxu0 %vm503_vm0, %v502_v0  ;;  %v70_v3 = vld [vmem:[#allocation3] sm:$0xff]  ;;  %v71_v4 = vld [vmem:[#allocation3 + $0x8] sm:$0xff]  ;;  %v401_v5 = vld [vmem:[#allocation8 + $0x18] sm:$0xff]   ;;  %vm96_vm1 = vcmask 261120   ;;  %vm183_vm2 = vcmask 523264   ;;  %vm319_vm3 = vcmask 122880  }
  0x2a   :  { %370 = vmatprep.subr.bf16.mxu1 %v502_v0  ;;  %378 = vmatprep.mubr.msk.bf16.mxu1 %vm503_vm0, %v502_v0  ;;  %v72_v6 = vpack.c.bf16 %v71_v4, %v70_v3  ;;  %v402_v7 = vld [vmem:[#allocation8 + $0x10] sm:$0xff]   ;;  %v403_v8 = vld [vmem:[#allocation8 + $0x8] sm:$0xff]   ;;  %v404_v9 = vld [vmem:[#allocation8] sm:$0xff]  }
  0x2b   :  { %363 = vmatpush3.bf16.msra.mxu0 %v399_v1  ;;  %371 = vmatpush3.bf16.msra.mxu1 %v401_v5  ;;  %v337_v10 = vld [vmem:[%s578_s2] ss:$0 sm:$0xff] }
  0x2c   :  { %364 = vmatprep.subr.bf16.mxu0 %v502_v0  ;;  %372 = vmatprep.subr.bf16.mxu1 %v502_v0  ;;  %v341_v22 = vld [vmem:[%s580_s4] ss:$0 sm:$0xff]  ;;  %s504_s4 = smov [#allocation9]  }
  0x2d   :  { %v230_v29 = vld [vmem:[%s581_s5] sm:$0xff]  ;;  %s327_s24 = sshll.u32 %s504_s4, 4  ;;  %s328_s24 = int_to_ptr.vmem [resolvable:$true] %s327_s24 }
  0x2e   :  { %s469_s5 = scalar_lea.vmem %s328_s24, 16  ;;  %s473_s25 = scalar_lea.vmem %s328_s24, 32 }
  0x2f   :  { %365 = vmatpush3.bf16.msra.mxu0 %v400_v2  ;;  %373 = vmatpush3.bf16.msra.mxu1 %v402_v7  ;;  %p470_p1 = scmp.ne.s32.totalorder %s328_s24, %s469_s5  ;;  %p474_p2 = scmp.lt.s32.totalorder %s328_s24, %s328_s24 }
  0x30   :  { %382 = vmatprep.subr.mxu0 %v502_v0  ;;  %374 = vmatprep.subr.bf16.mxu1 %v502_v0  ;;  %p475_p3 = scmp.lt.s32.totalorder %s473_s25, %s469_s5 }
  0x32   :  { %367 = vmatmul.mubr.msk.bf16.vlgmr.msra.gmra.mxu0 %vm96_vm1, %v72_v6  ;;  %p476_p4 = por %p475_p3, %p474_p2 }
  0x33   :  { %386 = vmatprep.mubr.msk.f32.mxu0 %vm503_vm0, %v502_v0  ;;  %375 = vmatpush3.bf16.msra.mxu1 %v403_v8 }
  0x34   :  { %376 = vmatprep.subr.bf16.mxu1 %v502_v0  ;;  %p477_p5 = pnand %p476_p4, %p470_p1 }
  0x37   :  { %377 = vmatpush3.bf16.msra.mxu1 %v404_v9 }
  0xf2   :  { %v134_v11 = vpop.f32.mrf.mxu0 }
  0xf3   :  { %v135_v13 = vadd.f32 %v337_v10, %v134_v11 }
  0xf4   :  { %v368_v12 = vpop.f32.mrf.mxu0 }
  0xf5   :  { %v141_v17 = vmax.f32 %v135_v13, 0.0 }
  0xf6   :  { %v137_v14 = vpop.f32.mrf.mxu0 }
  0xf7   :  { %v138_v15 = vadd.f32 %v337_v10, %v137_v14 }
  0xf8   :  { %v369_v16 = vpop.f32.mrf.mxu0 }
  0xf9   :  { %v142_v18 = vmax.f32 %v138_v15, 0.0 }
  0xfb   :  { %v143_v19 = vpack.c.bf16 %v142_v18, %v141_v17 }
  0xfd   :  { %379 = vmatmul.mubr.msk.bf16.vlgmr.msra.gmra.mxu1 %vm183_vm2, %v143_v19 }
 0x1bd   :  { %v221_v20 = vpop.f32.mrf.mxu1 }
 0x1be   :  { %v222_v26 = vadd.f32 %v341_v22, %v221_v20 }
 0x1bf   :  { %v380_v21 = vpop.f32.mrf.mxu1 }
 0x1c0   :  { %v228_v28 = vmax.f32 %v222_v26, 0.0 }
 0x1c1   :  { %v224_v23 = vpop.f32.mrf.mxu1 }
 0x1c2   :  { %v225_v24 = vadd.f32 %v341_v22, %v224_v23 }
 0x1c3   :  { %v381_v25 = vpop.f32.mrf.mxu1 }
 0x1c4   :  { %v229_v27 = vmax.f32 %v225_v24, 0.0 }
 0x1c6   :  { %383 = vmatpush3.xpose.msk.msra.mxu0 %vm183_vm2, %v229_v27 }
 0x1c7   :  { %384 = vmatprep.subr.mxu0 %v502_v0 }
 0x1ca   :  { %385 = vmatpush3.xpose.msk.msra.mxu0 %vm183_vm2, %v228_v28 }
 0x1cd   :  { %387 = vmatmul.mubr.msk.f32.vlgmr.msra.gmra.mxu0 %vm183_vm2, %v230_v29 }
 0x28d   :  { %v306_v31 = vpop.f32.mrf.mxu0 }
 0x28e   :  { %v312_v32 = vadd.f32 %v311_v30, %v306_v31 }
 0x28f   :  { %v388_v33 = vpop.f32.mrf.mxu0 }
 0x290   :  { %v350_v34 = vmul.f32 -1.442695, %v312_v32 }
 0x292   :  { %405 = vpow2.f32 %v350_v34 }
 0x29f   :  { %v406_v35 = vpop.eup %405 }
 0x2a0   :  { %v316_v36 = vadd.f32 1.0, %v406_v35 }
 0x2a2   :  { %407 = vrcp.f32 %v316_v36 }
 0x2af   :  { %v408_v37 = vpop.eup %407 }
 0x2b0   :  { %320 = vst.msk [vmem:[#allocation9] sm:$0x1] %vm319_vm3, %v408_v37 }
 0x2b1   :  { %480 = shalt.err (!%p477_p5)
}
 0x2b2   :  { %330 = dma.vmem_to_hbm [thread:$0]  %s328_s24, 16, %s583_s7, [#allocation5]  }
 0x2b3   :  { %493 = dma.done.wait [#allocation5], 16  }
 0x2b4   :  { %494 = vsyncadd [#allocation5], 4294967280 }
 0x2b5   :  { %334 = vsyncpa [#allocation4], 1 }
 0x2b6   :  { %335 = vsyncpa [#allocation7], 1 }
 0x2b7   :  { %336 = vsyncpa [#allocation5], 1 }

</bundles_post_ra>
